<compile_context>
chip_gen: v7x
topology: tpu7x:2x2x1
jax: 0.10.0
libtpu: 0.0.40
codegen_flags: <defaults>
</compile_context>

<pallas_src>
import jax
import jax.numpy as jnp
from jax.experimental import pallas as pl
from jax.experimental.pallas import tpu as pltpu

ONE_HOT_LEN = 821      # matches the PyTorch script's one_hot_len
EMBEDDING_LEN = 2      # matches the PyTorch script's embedding_len

SUBLANE = 8


def _round_up(x, m):
    return (x + m - 1) // m * m


def mlp_kernel(x_ref, w1_ref, b1_ref, w2_ref, b2_ref, o_ref):
    """Fused two-layer MLP on one batch tile.

    x_ref : [tb, D]   features (lane-padded to 896 by Mosaic inside VMEM)
    w1_ref: [E, D]    layer-1 weight in torch [out, in] layout (contract last axes)
    b1_ref: [1, E]
    w2_ref: [E, D]    layer-2 weight, rows = embedding components
    b2_ref: [1, D]
    o_ref : [tb, D]
    """
    x = x_ref[...]                                                   # [tb, D]
    # Layer 1: h = x @ W1^T + b1  -> one MXU matmul contracting the lane dims.
    h = jax.lax.dot_general(
        x, w1_ref[...],
        dimension_numbers=(((1,), (1,)), ((), ())),
        preferred_element_type=jnp.float32)                          # [tb, E]
    h = h + b1_ref[...]
    # Layer 2: K == E == 2 is degenerate on the MXU -> VPU rank-E update.
    E = w2_ref.shape[0]
    y = h[:, 0:1] * w2_ref[0:1, :]                                   # [tb, D]
    for e in range(1, E):                                            # static unroll (E = 2)
        y = y + h[:, e:e + 1] * w2_ref[e:e + 1, :]
    y = y + b2_ref[...]
    o_ref[...] = y.astype(o_ref.dtype)


def node_embedding_forward(x, w1, b1, w2, b2, *, tile_b=1024):
    """x: [B, D] f32; w1: [E, D]; b1: [1, E] or [E]; w2: [E, D]; b2: [1, D] or [D].

    Computes (x @ w1.T + b1) @ w2 + b2  ==  PyTorch
    Linear(D, E) -> Linear(E, D) with weights (w1, w2.T).
    """
    B, D = x.shape
    E = w1.shape[0]
    b1 = jnp.reshape(b1, (1, E))
    b2 = jnp.reshape(b2, (1, D))

    # Batch tile: sublane-aligned, no bigger than the (rounded-up) batch, and
    # capped so the grid has >= 2 steps when possible (keeps both v7x
    # TensorCores busy via dimension_semantics=("parallel",)).
    tile_b = _round_up(max(SUBLANE, min(tile_b, _round_up(B, SUBLANE))), SUBLANE)
    if B > SUBLANE:
        tile_b = min(tile_b, _round_up(pl.cdiv(B, 2), SUBLANE))

    grid = (pl.cdiv(B, tile_b),)   # last block may be partial: OOB reads are
                                   # garbage rows, OOB writes are masked off.

    cost = pl.CostEstimate(
        flops=4 * B * D * E,                               # two [B,D]x[D,E]-class layers
        transcendentals=0,
        bytes_accessed=4 * (2 * B * D + 2 * E * D + E + D),
    )

    out = pl.pallas_call(
        mlp_kernel,
        out_shape=jax.ShapeDtypeStruct((B, D), x.dtype),
        grid_spec=pltpu.PrefetchScalarGridSpec(
            num_scalar_prefetch=0,
            grid=grid,
            in_specs=[
                pl.BlockSpec((tile_b, D), lambda i: (i, 0)),  # x (batch-tiled, full feature dim)
                pl.BlockSpec((E, D), lambda i: (0, 0)),       # W1 (resident, lane-dense)
                pl.BlockSpec((1, E), lambda i: (0, 0)),       # b1 (resident)
                pl.BlockSpec((E, D), lambda i: (0, 0)),       # W2 (resident, lane-dense)
                pl.BlockSpec((1, D), lambda i: (0, 0)),       # b2 (resident)
            ],
            out_specs=pl.BlockSpec((tile_b, D), lambda i: (i, 0)),
        ),
        compiler_params=pltpu.CompilerParams(
            dimension_semantics=("parallel",),                 # shard batch tiles across TCs (v7x)
            vmem_limit_bytes=32 * 1024 * 1024,                 # safe on v7x's 64 MiB VMEM
        ),
        cost_estimate=cost,
    )(x, w1, b1, w2, b2)

    return out


def init_params(key, one_hot_len, embedding_len):
    """Deterministic init mimicking PyTorch nn.Linear default U[-1/sqrt(fan_in), 1/sqrt(fan_in)]."""
    k1, k2, k3, k4 = jax.random.split(key, 4)
    bound1 = float(one_hot_len) ** -0.5
    bound2 = float(embedding_len) ** -0.5
    # W1 kept in torch's native [out, in] = [E, D] layout (lane-dense on TPU).
    w1 = jax.random.uniform(k1, (embedding_len, one_hot_len), jnp.float32, -bound1, bound1)
    b1 = jax.random.uniform(k2, (1, embedding_len), jnp.float32, -bound1, bound1)
    # W2 stored as [E, D] (= transpose of torch's [D, E] weight) so rows are embedding comps.
    w2 = jax.random.uniform(k3, (embedding_len, one_hot_len), jnp.float32, -bound2, bound2)
    b2 = jax.random.uniform(k4, (1, one_hot_len), jnp.float32, -bound2, bound2)
    return w1, b1, w2, b2


if __name__ == "__main__":
    key = jax.random.PRNGKey(0)
    kx, kp = jax.random.split(key)

    batch = 20  # deliberately not a multiple of the tile to exercise the masked tail block
    x = jax.random.normal(kx, (batch, ONE_HOT_LEN), jnp.float32)
    w1, b1, w2, b2 = init_params(kp, ONE_HOT_LEN, EMBEDDING_LEN)

    out = node_embedding_forward(x, w1, b1, w2, b2)
    out = jax.block_until_ready(out)

    # Pure-JAX reference (same math as the PyTorch module's forward).
    ref = (x @ w1.T + b1) @ w2 + b2
    assert out.shape == (batch, ONE_HOT_LEN)
    assert jnp.allclose(out, ref, atol=1e-4, rtol=1e-4)

    print("KERNEL_OK")
</pallas_src>

<mosaic_0001>
module attributes {stable_mosaic.version = 11 : i64} {
  func.func @mlp_kernel(%arg0: i32, %arg1: memref<16x821xf32, #tpu.memory_space<vmem>>, %arg2: memref<2x821xf32, #tpu.memory_space<vmem>>, %arg3: memref<1x2xf32, #tpu.memory_space<vmem>>, %arg4: memref<2x821xf32, #tpu.memory_space<vmem>>, %arg5: memref<1x821xf32, #tpu.memory_space<vmem>>, %arg6: memref<16x821xf32, #tpu.memory_space<vmem>>) attributes {dimension_semantics = [#tpu.dimension_semantics<parallel>], iteration_bounds = array<i64: 2>, scalar_prefetch = 0 : i64, scratch_operands = 0 : i64, tpu.core_type = #tpu.core_type<tc>, window_params = [{transform_indices = @transform_0, window_bounds = array<i64: 16, 821>}, {pipeline_mode = #tpu.pipeline_mode<synchronous>, transform_indices = @transform_1, window_bounds = array<i64: 2, 821>}, {pipeline_mode = #tpu.pipeline_mode<synchronous>, transform_indices = @transform_2, window_bounds = array<i64: 1, 2>}, {pipeline_mode = #tpu.pipeline_mode<synchronous>, transform_indices = @transform_3, window_bounds = array<i64: 2, 821>}, {pipeline_mode = #tpu.pipeline_mode<synchronous>, transform_indices = @transform_4, window_bounds = array<i64: 1, 821>}, {transform_indices = @transform_5, window_bounds = array<i64: 16, 821>}]} {
    %c0 = arith.constant 0 : index
    %c0_0 = arith.constant 0 : index
    %0 = vector.load %arg1[%c0, %c0_0] : memref<16x821xf32, #tpu.memory_space<vmem>>, vector<16x821xf32>
    %c0_1 = arith.constant 0 : index
    %c0_2 = arith.constant 0 : index
    %1 = vector.load %arg2[%c0_1, %c0_2] : memref<2x821xf32, #tpu.memory_space<vmem>>, vector<2x821xf32>
    %cst = arith.constant dense<0.000000e+00> : vector<16x2xf32>
    %2 = tpu.matmul %0, %1, %cst {dimension_numbers = #tpu.dot_dimension_numbers<[1], [1], [0], [0], [0, 0, 1, 0], [], []>} : vector<16x821xf32>, vector<2x821xf32>, vector<16x2xf32> -> vector<16x2xf32>
    %c0_3 = arith.constant 0 : index
    %c0_4 = arith.constant 0 : index
    %3 = vector.load %arg3[%c0_3, %c0_4] : memref<1x2xf32, #tpu.memory_space<vmem>>, vector<1x2xf32>
    %4 = vector.broadcast %3 : vector<1x2xf32> to vector<16x2xf32>
    %5 = arith.addf %2, %4 : vector<16x2xf32>
    %6 = vector.extract_strided_slice %5 {offsets = [0, 0], sizes = [16, 1], strides = [1, 1]} : vector<16x2xf32> to vector<16x1xf32>
    %c0_5 = arith.constant 0 : index
    %c0_6 = arith.constant 0 : index
    %7 = vector.load %arg4[%c0_5, %c0_6] : memref<2x821xf32, #tpu.memory_space<vmem>>, vector<1x821xf32>
    %8 = vector.broadcast %6 : vector<16x1xf32> to vector<16x821xf32>
    %9 = vector.broadcast %7 : vector<1x821xf32> to vector<16x821xf32>
    %10 = arith.mulf %8, %9 : vector<16x821xf32>
    %11 = vector.extract_strided_slice %5 {offsets = [0, 1], sizes = [16, 1], strides = [1, 1]} : vector<16x2xf32> to vector<16x1xf32>
    %c1 = arith.constant 1 : index
    %c0_7 = arith.constant 0 : index
    %12 = vector.load %arg4[%c1, %c0_7] : memref<2x821xf32, #tpu.memory_space<vmem>>, vector<1x821xf32>
    %13 = vector.broadcast %11 : vector<16x1xf32> to vector<16x821xf32>
    %14 = vector.broadcast %12 : vector<1x821xf32> to vector<16x821xf32>
    %15 = arith.mulf %13, %14 : vector<16x821xf32>
    %16 = arith.addf %10, %15 : vector<16x821xf32>
    %c0_8 = arith.constant 0 : index
    %c0_9 = arith.constant 0 : index
    %17 = vector.load %arg5[%c0_8, %c0_9] : memref<1x821xf32, #tpu.memory_space<vmem>>, vector<1x821xf32>
    %18 = vector.broadcast %17 : vector<1x821xf32> to vector<16x821xf32>
    %19 = arith.addf %16, %18 : vector<16x821xf32>
    %c0_10 = arith.constant 0 : index
    %c0_11 = arith.constant 0 : index
    %20 = vector.load %arg6[%c0_10, %c0_11] : memref<16x821xf32, #tpu.memory_space<vmem>>, vector<16x821xf32>
    tpu.vector_store %arg6[%c0_10, %c0_11], %19 {strides = array<i32>} : memref<16x821xf32, #tpu.memory_space<vmem>>, vector<16x821xf32>,
    return
  }
  func.func @transform_0(%arg0: i32) -> (i32, i32) {
    %c0_i32 = arith.constant 0 : i32
    %c0_i32_0 = arith.constant 0 : i32
    return %arg0, %c0_i32 : i32, i32
  }
  func.func @transform_1(%arg0: i32) -> (i32, i32) {
    %c0_i32 = arith.constant 0 : i32
    %c0_i32_0 = arith.constant 0 : i32
    %c0_i32_1 = arith.constant 0 : i32
    return %c0_i32, %c0_i32_0 : i32, i32
  }
  func.func @transform_2(%arg0: i32) -> (i32, i32) {
    %c0_i32 = arith.constant 0 : i32
    %c0_i32_0 = arith.constant 0 : i32
    %c0_i32_1 = arith.constant 0 : i32
    return %c0_i32, %c0_i32_0 : i32, i32
  }
  func.func @transform_3(%arg0: i32) -> (i32, i32) {
    %c0_i32 = arith.constant 0 : i32
    %c0_i32_0 = arith.constant 0 : i32
    %c0_i32_1 = arith.constant 0 : i32
    return %c0_i32, %c0_i32_0 : i32, i32
  }
  func.func @transform_4(%arg0: i32) -> (i32, i32) {
    %c0_i32 = arith.constant 0 : i32
    %c0_i32_0 = arith.constant 0 : i32
    %c0_i32_1 = arith.constant 0 : i32
    return %c0_i32, %c0_i32_0 : i32, i32
  }
  func.func @transform_5(%arg0: i32) -> (i32, i32) {
    %c0_i32 = arith.constant 0 : i32
    %c0_i32_0 = arith.constant 0 : i32
    return %arg0, %c0_i32 : i32, i32
  }
}

</mosaic_0001>

<bundles_post_ra>
// kernel: tpu_custom_call.1
= control target key start
LH: loop header
LB: loop body
LE: loop exit
PB: predicated region body
PF: predicated region fallthrough
CT: control target
= control target key end

     0   :  { %10 = vsyncpa [#allocation3], 0  ;;  %s1624_s0 = inlined_call_operand.hbm [shape: f32[20,821], index: 0, kind: input, shape index: {}]   ;;  %s1625_s1 = inlined_call_operand.hbm [shape: f32[2,821], index: 1, kind: input, shape index: {}]   ;;  %s1626_s2 = inlined_call_operand.vmem [shape: f32[1,2], index: 2, kind: input, shape index: {}]   ;;  %s1627_s3 = inlined_call_operand.hbm [shape: f32[2,821], index: 3, kind: input, shape index: {}]   ;;  %s1628_s4 = inlined_call_operand.vmem [shape: f32[1,821], index: 4, kind: input, shape index: {}]   ;;  %s1629_s5 = inlined_call_operand.hbm [shape: f32[20,821], index: 5, kind: output, shape index: {}]  }
   0x1   :  { %12 = vsyncpa [#allocation3 + $0x1], 0 }
   0x2   :  { %13 = vsyncpa [#allocation6], 0 }
   0x3   :  { %14 = vsyncpa [#allocation4], 0 }
   0x4   :  { %16 = vsyncpa [#allocation4 + $0x1], 0  ;;  %s1292_s18 = smov 0   ;;  %s1294_s19 = smov 0  }
   0x5   :  { %s1296_s20 = smov 0   ;;  %s1298_s21 = smov 0  }
   0x6 LB: > { %s1313_s22 = sadd.s32 4294967295, %s1249_s21   ;;  %s975_s23 = sadd.s32 4294967294, %s1249_s21   ;;  %s1249_s21 = sphi %s1298_s21, %s1649_s21   ;;  %s1245_s20 = sphi %s1296_s20, %s1648_s20   ;;  %s1241_s19 = sphi %s1294_s19, %s1647_s19   ;;  %s1237_s18 = sphi %s1292_s18, %s1646_s18  }
   0x7   : > { %s1317_s24 = sadd.s32 1, %s1249_s21   ;;  %s29_s25 = sadd.s32 1, %s1245_s20 }
   0x8   : > { %s26_s26 = ssub.s32 %s1249_s21, %s1317_s24  ;;  %p36_p0 = scmp.ne.s32.totalorder %s1245_s20, %s1241_s19 }
   0x9   : > { %p27_p1 = scmp.eq.s32.totalorder %s26_s26, 0  ;;  %p37_p2 = scmp.eq.s32.totalorder %s1249_s21, 0 }
   0xa   : > { %p42_p3 = scmp.ne.s32.totalorder %s1241_s19, %s1237_s18  ;;  %p1630_p4 = scmp.eq.s32.totalorder %s1313_s22, 0 }
   0xb   : > { %s1329_s27 = scalar_select %p27_p1, %s1245_s20, %s29_s25  }
   0xc   : > { %p1331_p5 = por %p37_p2, %p36_p0  ;;  %p1337_p6 = por %p1630_p4, %p42_p3 }
   0xd   : > { %p150_p7 = scmp.eq.s32.totalorder %s1313_s22, 1  ;;  %p156_p8 = scmp.eq.s32.totalorder %s975_s23, 1 }
   0xe   : > { %s1633_s28 = scalar_select %p1331_p5, 1, 0 }
   0xf   : > { %s1634_s29 = scalar_select %p1337_p6, 1, 0 }
  0x10   : > { %p976_p9 = scmp.ge.s32.totalorder %s1249_s21, 1  ;;  %p163_p10 = scmp.lt.s32.totalorder %s1249_s21, 3 }
  0x11   : > { %p1344_p11 = por %p150_p7, %p36_p0  ;;  %p1348_p12 = por %p156_p8, %p42_p3 }
  0x12   : > { %p1352_p13 = pnand %p976_p9, %p163_p10  ;;  %s1251_s8 = smov [#allocation5]  }
  0x13   : > { %s1635_s30 = scalar_select %p1344_p11, 1, 0 }
  0x14   : > { %s1636_s6 = scalar_select %p1348_p12, 1, 0 }
  0x15   : > { %s1637_s7 = scalar_select %p1352_p13, 1, 0 }
  0x16   : > { %p1033_p1 = pneg %p1352_p13  ;;  %s176_s9 = sshll.u32 %s1251_s8, 4  ;;  %s177_s9 = int_to_ptr.vmem [resolvable:$true] %s176_s9 }
  0x17   : > { %s1252_s10 = smov [#allocation7]   ;;  %s1095_s15 = scalar_lea.hbm %s1625_s1, 224 }
  0x18   : > { %s190_s11 = sshll.u32 %s1252_s10, 4  ;;  %p1360_p0 = pnand %p1033_p1, %p1630_p4  ;;  %s1364_s11 = int_to_ptr.vmem [resolvable:$true] %s190_s11 }
  0x19   : > { %p1096_p2 = scmp.ne.s32.totalorder %s1625_s1, %s1095_s15  ;;  %p1102_p9 = scmp.lt.u32.totalorder %s1095_s15, %s1625_s1 }
  0x1a   : > { %p1097_p3 = pneg %p1360_p0 }
  0x1c   : > { %p1098_p7 = pnand %p1097_p3, %p1096_p2 }
  0x1e   : > { %p1099_p8 = pneg %p1098_p7 }
  0x20   : > { %p1104_p10 = pnand %p1102_p9, %p1099_p8 }
  0x22   : > { %1107 = shalt.err (!%p1104_p10)
}
  0x23   : > { %s1108_s26 = scalar_lea.vmem %s177_s9, 224  ;;  %p1116_p11 = scmp.lt.s32.totalorder %s177_s9, %s177_s9 }
  0x24   : > { %p1109_p1 = scmp.ne.s32.totalorder %s177_s9, %s1108_s26  ;;  %p1117_p6 = scmp.lt.s32.totalorder %s1108_s26, %s1108_s26 }
  0x26   : > { %p1111_p4 = pnand %p1109_p1, %p1097_p3  ;;  %p1118_p13 = por %p1117_p6, %p1116_p11 }
  0x28   : > { %p1112_p12 = pneg %p1111_p4 }
  0x2a   : > { %p1119_p5 = pnand %p1118_p13, %p1112_p12 }
  0x2c   : > { %1122 = shalt.err (!%p1119_p5)
}
  0x2d   : > { %1036 = dma.hbm_to_vmem [thread:$0]  (!%p1360_p0), %s1625_s1, 224, %s177_s9, [#allocation6]  }
  0x2e   : > { %s1123_s15 = scalar_lea.hbm %s1627_s3, 224 }
  0x2f   : > { %p1124_p4 = scmp.ne.s32.totalorder %s1627_s3, %s1123_s15  ;;  %p1130_p5 = scmp.lt.u32.totalorder %s1123_s15, %s1627_s3 }
  0x31   : > { %p1126_p6 = pnand %p1124_p4, %p1097_p3 }
  0x33   : > { %p1127_p11 = pneg %p1126_p6 }
  0x35   : > { %p1132_p12 = pnand %p1130_p5, %p1127_p11 }
  0x37   : > { %1135 = shalt.err (!%p1132_p12)
}
  0x38   : > { %s1136_s9 = scalar_lea.vmem %s1364_s11, 224  ;;  %p1144_p8 = scmp.lt.s32.totalorder %s1364_s11, %s1364_s11 }
  0x39   : > { %p1137_p13 = scmp.ne.s32.totalorder %s1364_s11, %s1136_s9  ;;  %p1145_p9 = scmp.lt.s32.totalorder %s1136_s9, %s1136_s9 }
  0x3b   : > { %p1139_p2 = pnand %p1137_p13, %p1097_p3  ;;  %p1146_p10 = por %p1145_p9, %p1144_p8 }
  0x3d   : > { %p1140_p7 = pneg %p1139_p2 }
  0x3f   : > { %p1147_p1 = pnand %p1146_p10, %p1140_p7 }
  0x41   : > { %1150 = shalt.err (!%p1147_p1)
}
  0x42   : > { %1039 = dma.hbm_to_vmem [thread:$0]  (!%p1360_p0), %s1627_s3, 224, %s1364_s11, [#allocation6]  }
  0x43   : > { %p979_p4 = scmp.ge.s32.totalorder %s1249_s21, 2 }
  0x44   : > { %p1639_p3 = scmp.ne.s32.totalorder (!%p979_p4), %s1633_s28, 0 }
  0x45   : > { %200 = sbr.rel (%p979_p4) target bundleno = 112 (0x70), region = 32 }
  0x4c   : > { %203 = sbr.rel (!%p1639_p3) target bundleno = 112 (0x70), region = 36  ;;  %s204_s10 = sand.u32 (%p1639_p3), 1, %s1245_s20  }
  0x4d   : > { %s980_s13 = sshll.u32 (%p1639_p3), %s1249_s21, 1  ;;  %s1019_s14 = smul.u32 (%p1639_p3), 112, %s204_s10 }
  0x4e   : > { %s210_s15 = ssub.s32 (%p1639_p3), 3, %s980_s13  ;;  %s1423_s16 = scalar_lea.sflag (%p1639_p3), [#allocation3], %s204_s10 }
  0x4f   : > { %p211_p6 = scmp.lt.s32.totalorder (%p1639_p3), %s210_s15, 2  ;;  %s208_s17 = scalar_lea.vmem (%p1639_p3), [#allocation2], %s1019_s14 }
  0x53   : > { %s1651_s15 = smov (!%p211_p6, %s210_s15), 2 }
  0x54   : > { %s1420_s12 = smul.u32 896, %s1651_s15 }
  0x56   : > { %s216_s11 = ssub.s32 1792, %s1420_s12 }
  0x57   : > { %217 = vsyncadd %s1423_s16, %s216_s11  ;;  %p983_p0 = scmp.ne.s32.totalorder %s1420_s12, 0  ;;  %s1020_s28 = smul.u32 1792, %s1249_s21 }
  0x58   : > { %s223_s23 = sshll.u32 %s208_s17, 4  ;;  %s1155_s14 = scalar_lea.hbm %s1624_s0, 2688  ;;  %s1433_s23 = int_to_ptr.vmem [resolvable:$true] %s223_s23 }
  0x59   : > { %s1431_s26 = scalar_lea.hbm %s1624_s0, %s1020_s28 }
  0x5a   : > { %s1151_s8 = scalar_lea.hbm %s1431_s26, %s1420_s12  ;;  %p1156_p13 = scmp.lt.u32.totalorder %s1431_s26, %s1624_s0 }
  0x5b   : > { %p1152_p11 = scmp.ne.s32.totalorder %s1431_s26, %s1151_s8  ;;  %p1157_p2 = scmp.lt.u32.totalorder %s1155_s14, %s1151_s8 }
  0x5c   : > { %p1159_p8 = scmp.lt.u32.totalorder %s1151_s8, %s1431_s26 }
  0x5d   : > { %p1153_p5 = pnand %p1152_p11, %p983_p0  ;;  %p1158_p7 = por %p1157_p2, %p1156_p13 }
  0x5f   : > { %p1154_p12 = pneg %p1153_p5  ;;  %p1160_p9 = por %p1159_p8, %p1158_p7 }
  0x61   : > { %p1161_p10 = pnand %p1160_p9, %p1154_p12 }
  0x63   : > { %1164 = shalt.err (!%p1161_p10)
}
  0x64   : > { %s1165_s17 = scalar_lea.vmem %s1433_s23, %s1420_s12  ;;  %s1253_s28 = smov [#allocation2]  }
  0x65   : > { %p1166_p1 = scmp.ne.s32.totalorder %s1433_s23, %s1165_s17  ;;  %s1169_s25 = sshll.u32 %s1253_s28, 4  ;;  %s1170_s25 = int_to_ptr.vmem [resolvable:$false] %s1169_s25 }
  0x66   : > { %s1171_s9 = scalar_lea.vmem %s1170_s25, 3584  ;;  %p1172_p11 = scmp.lt.s32.totalorder %s1433_s23, %s1170_s25 }
  0x67   : > { %p1167_p3 = pnand %p1166_p1, %p983_p0  ;;  %p1173_p5 = scmp.lt.s32.totalorder %s1171_s9, %s1165_s17 }
  0x69   : > { %p1168_p6 = pneg %p1167_p3  ;;  %p1174_p13 = por %p1173_p5, %p1172_p11 }
  0x6b   : > { %p1175_p2 = pnand %p1174_p13, %p1168_p6 }
  0x6d   : > { %1178 = shalt.err (!%p1175_p2)
}
  0x6e   : > { %s1254_s8 = smov 896   ;;  %s1255_s10 = smov 56  }
  0x6f   : > { %229 = dma.hbm_to_vmem [thread:$0]  (%p983_p0), %s1431_s26, %s1420_s12, %s1433_s23, %s1423_s16, %s1254_s8, %s1254_s8, %s1255_s10  }
  0x70 PF: > { %p1640_p12 = scmp.ne.s32.totalorder %s1637_s7, 0 }
  0x71   : > { %s1463_s13 = sand.u32 (!%p1640_p12), 1, %s1241_s19   ;;  %p1641_p7 = scmp.ne.s32.totalorder (!%p1640_p12), %s1634_s29, 0 }
  0x72   : > { %235 = sbr.rel (%p1640_p12) target bundleno = 540 (0x21c), region = 40  ;;  %s238_s15 = scalar_lea.sflag (!%p1640_p12), [#allocation3], %s1463_s13 }
  0x73   : > { %s1021_s14 = smul.u32 (!%p1640_p12), 112, %s1463_s13 }
  0x75   : > { %s1469_s11 = scalar_lea.vmem (!%p1640_p12), [#allocation2], %s1021_s14 }
  0x79   : > { %1224 = dma.done.wait (%p1641_p7), %s238_s15, 1792  }
  0x7a   : > { %1226 = vsyncadd (%p1641_p7), %s238_s15, 4294965504  ;;  %p1642_p0 = scmp.eq.s32.totalorder %s1313_s22, 0 }
  0x7c   : > { %1228 = dma.done.wait (%p1642_p0), [#allocation6], 448   ;;  %p1643_p8 = pmov %p1642_p0 }
  0x7d   : > { %v317_v0 = vlaneseq  ;;  %v1256_v1 = vmov 1983009808   ;;  %v302_v6 = vld [vmem:[#allocation5] sm:$0xff]  ;;  %v291_v7 = vld [vmem:[%s1469_s11 + $0x18] sm:$0xff]  ;;  %v289_v8 = vld [vmem:[%s1469_s11 + $0x8] sm:$0xff]  ;;  %vm352_vm0 = vcmask 433152  }
  0x7e   : > { %1230 = vsyncadd (%p1643_p8), [#allocation6], 4294966848  ;;  %v315_v2 = vunpack.c.l.s4 %v1256_v1  ;;  %v313_v9 = vcombine.high %v302_v6, %v302_v6  ;;  %500 = vmatprep.mubr.f32.mxu0 %v291_v7  ;;  %425 = vmatprep.mubr.f32.mxu1 %v289_v8  ;;  %v303_v11 = vld [vmem:[#allocation5 + $0x8] sm:$0x3f]  ;;  %v288_v19 = vld [vmem:[%s1469_s11] sm:$0xff]  ;;  %v1257_v31 = vmov 1  }
  0x7f   : > { %v1479_v3 = vshrl.u32 %v317_v0, 7  ;;  %v330_v12 = vcombine.high %v303_v11, %v303_v11  ;;  %v296_v20 = vld [vmem:[%s1469_s11 + $0x40] sm:$0xff]  ;;  %v290_v21 = vld [vmem:[%s1469_s11 + $0x10] sm:$0xff]  ;;  %v295_v23 = vld [vmem:[%s1469_s11 + $0x38] sm:$0xff]  ;;  %1091 = vset.pattern.permute.xlu1 %v1257_v31  ;;  %v1258_v32 = vmov 0   ;;  %s1536_s23 = scalar_lea.vmem [#allocation8], %s1021_s14 }
  0x80   : > { %v316_v4 = vunpack.c.0.s8 %v315_v2  ;;  %v298_v22 = vld [vmem:[%s1469_s11 + $0x50] sm:$0xff]  ;;  %v297_v25 = vld [vmem:[%s1469_s11 + $0x48] sm:$0xff]  ;;  %v292_v28 = vld [vmem:[%s1469_s11 + $0x20] sm:$0xff]  ;;  %1090 = vset.pattern.permute.xlu0 %v1258_v32  ;;  %s862_s26 = scalar_lea.sflag [#allocation4], %s1463_s13  ;;  %p1644_p9 = scmp.ne.s32.totalorder %s1635_s30, 0 }
  0x81   : > { %v294_v24 = vld [vmem:[%s1469_s11 + $0x30] sm:$0xff]  ;;  %v293_v26 = vld [vmem:[%s1469_s11 + $0x28] sm:$0xff]  ;;  %v300_v29 = vld [vmem:[%s1469_s11 + $0x60] sm:$0xff]  ;;  %v675_v50 = vsub.s32 0, %v1479_v3  ;;  %v679_v51 = vsub.s32 1, %v1479_v3  ;;  %v683_v52 = vsub.s32 2, %v1479_v3 }
  0x82   : > { %v319_v5 = vsub.s32 %v316_v4, %v1479_v3  ;;  %v301_v27 = vld [vmem:[%s1469_s11 + $0x68] sm:$0xff]  ;;  %v299_v30 = vld [vmem:[%s1469_s11 + $0x58] sm:$0xff]  ;;  %v990_v37 = vld [vmem:[%s1626_s2] ss:$0 sm:$0xff]  ;;  %v687_v53 = vsub.s32 3, %v1479_v3  ;;  %v691_v54 = vsub.s32 4, %v1479_v3 }
  0x83   : > { %v695_v55 = vsub.s32 5, %v1479_v3  ;;  %v699_v56 = vsub.s32 6, %v1479_v3  ;;  %v723_v57 = vld [vmem:[#allocation7 + $0x1] ss:$2 sm:$0x7f]  ;;  %s994_s17 = sshll.u32 (%p1644_p9), %s1313_s22, 1 }
  0x84   : > { %v320_v10 = vrot.slane %v302_v6, %v319_v5  ;;  %v337_v13 = vrot.slane %v303_v11, %v319_v5  ;;  %v327_v14 = vrot.slane %v313_v9, %v319_v5  ;;  %v344_v16 = vrot.slane %v330_v12, %v319_v5  ;;  %v661_v58 = vld [vmem:[#allocation7] ss:$2 sm:$0x7f]  ;;  %v796_v63 = vld [vmem:[%s1628_s4] sm:$0x7f]  ;;  %s870_s28 = ssub.s32 (%p1644_p9), 3, %s994_s17 }
  0x85   : > { %v736_v59 = vrot.slane %v723_v57, %v675_v50  ;;  %v740_v60 = vrot.slane %v723_v57, %v679_v51  ;;  %v744_v61 = vrot.slane %v723_v57, %v683_v52  ;;  %v748_v62 = vrot.slane %v723_v57, %v687_v53  ;;  %p871_p10 = scmp.lt.s32.totalorder (%p1644_p9), %s870_s28, 2 }
  0x86   : > { %v328_v15 = vcombine.high %v320_v10, %v320_v10  ;;  %v329_v17 = vcombine.high %v327_v14, %v327_v14  ;;  %v345_v18 = vcombine.high %v337_v13, %v337_v13  ;;  %v752_v0 = vrot.slane %v723_v57, %v691_v54 }
  0x87   : > { %v756_v1 = vrot.slane %v723_v57, %v695_v55  ;;  %v760_v2 = vrot.slane %v723_v57, %v699_v56  ;;  %v676_v4 = vrot.slane %v661_v58, %v675_v50  ;;  %v680_v5 = vrot.slane %v661_v58, %v679_v51 }
  0x88   : > { %361 = vmatprep.subr.mxu1 %v328_v15  ;;  %436 = vmatprep.subr.mxu0 %v329_v17  ;;  %v684_v6 = vrot.slane %v661_v58, %v683_v52  ;;  %v688_v7 = vrot.slane %v661_v58, %v687_v53  ;;  %v692_v8 = vrot.slane %v661_v58, %v691_v54 }
  0x89   : > { %362 = vmatpush1.xpose.msra.mxu1 %v320_v10  ;;  %437 = vmatpush1.xpose.msra.mxu0 %v327_v14  ;;  %v696_v9 = vrot.slane %v661_v58, %v695_v55  ;;  %v700_v3 = vrot.slane %v661_v58, %v699_v56  ;;  %v1513_v10 = vrot.slane %v796_v63, %v675_v50 }
  0x8a   : > { %1006 = vmatprep.subr.msk.mxu1 %vm352_vm0, %v344_v16  ;;  %511 = vmatprep.subr.mxu0 %v345_v18  ;;  %v1515_v11 = vrot.slane %v796_v63, %v679_v51  ;;  %v1517_v14 = vrot.slane %v796_v63, %v683_v52  ;;  %v1519_v15 = vrot.slane %v796_v63, %v687_v53 }
  0x8b   : > { %v1523_v17 = vrot.slane %v796_v63, %v695_v55 }
  0x8c   : > { %426 = vmatmul.mubr.f32.vlgmr.msra.gmra.mrb[0].mxu1 %v288_v19  ;;  %501 = vmatmul.mubr.f32.vlgmr.msra.gmra.mrb[0].mxu0 %v290_v21  ;;  %v1525_v21 = vrot.slane %v796_v63, %v699_v56 }
  0x8d   : > { %1007 = vmatpush3.xpose.msk.msra.mxu1 %vm352_vm0, %v344_v16  ;;  %430 = vmatprep.mubr.f32.mxu1 %v296_v20  ;;  %v1521_v16 = vrot.slane %v796_v63, %v691_v54 }
  0x8e   : > { %512 = vmatpush1.xpose.msra.mxu0 %v337_v13  ;;  %505 = vmatprep.mubr.f32.mxu0 %v298_v22 }
  0x90   : > { %431 = vmatmul.mubr.f32.gmra.mrb[2].mxu1 %v295_v23  ;;  %506 = vmatmul.mubr.f32.gmra.mrb[2].mxu0 %v297_v25 }
  0x91   : > { %1008 = vmatprep.mubr.msk.f32.mxu1 %vm352_vm0, %v294_v24  ;;  %575 = vmatprep.mubr.f32.mxu0 %v293_v26 }
  0x94   : > { %1009 = vmatmul.mubr.msk.f32.vlgmr.msra.gmra.mrb[4].mxu1 %vm352_vm0, %v301_v27  ;;  %576 = vmatmul.mubr.f32.vlgmr.msra.gmra.mrb[0].mxu0 %v292_v28 }
  0x95   : > { %580 = vmatprep.mubr.f32.mxu0 %v300_v29 }
  0x98   : > { %581 = vmatmul.mubr.f32.gmra.mrb[2].mxu0 %v299_v30 }
 0x15f   : > { %v427_v33 = vpop.f32.mrb[0].mxu1 }
 0x160   : > { %v429_v34 = vpop.f32.mrb[1].mxu1  ;;  %v428_v39 = vadd.f32 %v990_v37, %v427_v33 }
 0x163   : > { %v432_v35 = vpop.f32.mrb[2].mxu1 }
 0x164   : > { %v434_v36 = vpop.f32.mrb[3].mxu1  ;;  %v433_v44 = vadd.f32 %v990_v37, %v432_v35 }
 0x167   : > { %v1010_v38 = vpop.f32.mrb[4].mxu1  ;;  %v577_v41 = vpop.f32.mrb[0].mxu0 }
 0x168   : > { %v652_v40 = vpop.f32.mrb[5].mxu1  ;;  %v1012_v42 = vadd.f32 %v577_v41, %v428_v39  ;;  %v579_v43 = vpop.f32.mrb[1].mxu0 }
 0x16a   : > { %v653_v45 = vadd.f32 %v1012_v42, %v652_v40 }
 0x16b   : > { %v582_v46 = vpop.f32.mrb[2].mxu0 }
 0x16c   : > { %v1014_v47 = vadd.f32 %v582_v46, %v433_v44  ;;  %v584_v48 = vpop.f32.mrb[3].mxu0  ;;  %725 = vperm.xlu1 %1091, %v653_v45   ;;  %664 = vperm.xlu0 %1090, %v653_v45  }
 0x16e   : > { %v658_v49 = vadd.f32 %v1014_v47, %v1010_v38 }
 0x170   : > { %729 = vperm.xlu1 %1091, %v658_v49   ;;  %669 = vperm.xlu0 %1090, %v658_v49  }
 0x174   : > { %1092 = vset.pattern.permute.xlu0 %v1257_v31 }
 0x1eb   : > { %v726_v12 = vpop.permute.xlu1 %725  ;;  %v665_v13 = vpop.permute.xlu0 %664 }
 0x1ec   : > { %v768_v18 = vmul.f32 %v736_v59, %v726_v12  ;;  %v769_v19 = vmul.f32 %v740_v60, %v726_v12  ;;  %v770_v20 = vmul.f32 %v744_v61, %v726_v12  ;;  %v771_v22 = vmul.f32 %v748_v62, %v726_v12 }
 0x1ed   : > { %v772_v23 = vmul.f32 %v752_v0, %v726_v12  ;;  %v773_v24 = vmul.f32 %v756_v1, %v726_v12  ;;  %v708_v25 = vmul.f32 %v676_v4, %v665_v13  ;;  %v709_v26 = vmul.f32 %v680_v5, %v665_v13 }
 0x1ee   : > { %v710_v27 = vmul.f32 %v684_v6, %v665_v13  ;;  %v711_v28 = vmul.f32 %v688_v7, %v665_v13  ;;  %v712_v29 = vmul.f32 %v692_v8, %v665_v13  ;;  %v774_v30 = vmul.f32 %v760_v2, %v726_v12 }
 0x1ef   : > { %v730_v31 = vpop.permute.xlu1 %729  ;;  %v713_v32 = vmul.f32 %v696_v9, %v665_v13  ;;  %v714_v33 = vmul.f32 %v700_v3, %v665_v13  ;;  %v782_v34 = vadd.f32 %v768_v18, %v708_v25  ;;  %v670_v39 = vpop.permute.xlu0 %669  ;;  %v783_v43 = vadd.f32 %v769_v19, %v709_v26 }
 0x1f0   : > { %v775_v35 = vmul.f32 %v736_v59, %v730_v31  ;;  %v776_v36 = vmul.f32 %v740_v60, %v730_v31  ;;  %v777_v37 = vmul.f32 %v744_v61, %v730_v31  ;;  %v778_v38 = vmul.f32 %v748_v62, %v730_v31 }
 0x1f1   : > { %v779_v40 = vmul.f32 %v752_v0, %v730_v31  ;;  %v780_v41 = vmul.f32 %v756_v1, %v730_v31  ;;  %v781_v42 = vmul.f32 %v760_v2, %v730_v31  ;;  %v784_v44 = vadd.f32 %v770_v20, %v710_v27 }
 0x1f2   : > { %v785_v45 = vadd.f32 %v771_v22, %v711_v28  ;;  %v786_v46 = vadd.f32 %v772_v23, %v712_v29  ;;  %v787_v47 = vadd.f32 %v773_v24, %v713_v32  ;;  %v788_v48 = vadd.f32 %v774_v30, %v714_v33 }
 0x1f3   : > { %v833_v49 = vadd.f32 %v1513_v10, %v782_v34  ;;  %v834_v50 = vadd.f32 %v1515_v11, %v783_v43  ;;  %v715_v51 = vmul.f32 %v676_v4, %v670_v39  ;;  %v835_v52 = vadd.f32 %v1517_v14, %v784_v44 }
 0x1f4   : > { %v836_v53 = vadd.f32 %v1519_v15, %v785_v45  ;;  %v837_v54 = vadd.f32 %v1521_v16, %v786_v46  ;;  %v838_v55 = vadd.f32 %v1523_v17, %v787_v47  ;;  %v839_v56 = vadd.f32 %v1525_v21, %v788_v48 }
 0x1f5   : > { %847 = vst [vmem:[%s1536_s23] sm:$0xff] %v833_v49  ;;  %848 = vst [vmem:[%s1536_s23 + $0x8] sm:$0xff] %v834_v50  ;;  %v716_v57 = vmul.f32 %v680_v5, %v670_v39  ;;  %v717_v58 = vmul.f32 %v684_v6, %v670_v39  ;;  %v718_v59 = vmul.f32 %v688_v7, %v670_v39 }
 0x1f6   : > { %849 = vst [vmem:[%s1536_s23 + $0x10] sm:$0xff] %v835_v52  ;;  %850 = vst [vmem:[%s1536_s23 + $0x18] sm:$0xff] %v836_v53  ;;  %v719_v60 = vmul.f32 %v692_v8, %v670_v39  ;;  %v720_v61 = vmul.f32 %v696_v9, %v670_v39  ;;  %v721_v62 = vmul.f32 %v700_v3, %v670_v39 }
 0x1f7   : > { %851 = vst [vmem:[%s1536_s23 + $0x20] sm:$0xff] %v837_v54  ;;  %852 = vst [vmem:[%s1536_s23 + $0x28] sm:$0xff] %v838_v55  ;;  %v789_v63 = vadd.f32 %v775_v35, %v715_v51  ;;  %v790_v0 = vadd.f32 %v776_v36, %v716_v57  ;;  %v791_v1 = vadd.f32 %v777_v37, %v717_v58 }
 0x1f8   : > { %853 = vst.msk [vmem:[%s1536_s23 + $0x30] sm:$0xff] %vm352_vm0, %v839_v56  ;;  %v792_v2 = vadd.f32 %v778_v38, %v718_v59  ;;  %v793_v4 = vadd.f32 %v779_v40, %v719_v60  ;;  %v794_v5 = vadd.f32 %v780_v41, %v720_v61  ;;  %v795_v6 = vadd.f32 %v781_v42, %v721_v62  ;;  %868 = sbr.rel (!%p1644_p9) target bundleno = 540 (0x21c), region = 56 }
 0x1f9   : > { %v840_v7 = vadd.f32 %v1513_v10, %v789_v63  ;;  %v841_v8 = vadd.f32 %v1515_v11, %v790_v0  ;;  %v842_v9 = vadd.f32 %v1517_v14, %v791_v1 }
 0x1fa   : > { %v843_v3 = vadd.f32 %v1519_v15, %v792_v2  ;;  %v844_v12 = vadd.f32 %v1521_v16, %v793_v4  ;;  %v845_v13 = vadd.f32 %v1523_v17, %v794_v5  ;;  %v846_v18 = vadd.f32 %v1525_v21, %v795_v6 }
 0x1fb   : > { %854 = vst [vmem:[%s1536_s23 + $0x38] sm:$0xff] %v840_v7  ;;  %855 = vst [vmem:[%s1536_s23 + $0x40] sm:$0xff] %v841_v8 }
 0x1fc   : > { %856 = vst [vmem:[%s1536_s23 + $0x48] sm:$0xff] %v842_v9  ;;  %857 = vst [vmem:[%s1536_s23 + $0x50] sm:$0xff] %v843_v3 }
 0x1fd   : > { %858 = vst [vmem:[%s1536_s23 + $0x58] sm:$0xff] %v844_v12  ;;  %859 = vst [vmem:[%s1536_s23 + $0x60] sm:$0xff] %v845_v13 }
 0x1fe   : > { %860 = vst.msk [vmem:[%s1536_s23 + $0x68] sm:$0xff] %vm352_vm0, %v846_v18 }
 0x1ff   : > { %s1653_s28 = smov (!%p871_p10, %s870_s28), 2 }
 0x200   : > { %s1565_s25 = smul.u32 896, %s1653_s28 }
 0x202   : > { %s876_s9 = ssub.s32 1792, %s1565_s25 }
 0x203   : > { %877 = vsyncadd %s862_s26, %s876_s9  ;;  %p997_p1 = scmp.ne.s32.totalorder %s1565_s25, 0  ;;  %s1022_s30 = smul.u32 1792, %s1313_s22 }
 0x204   : > { %s883_s8 = sshll.u32 %s1536_s23, 4  ;;  %s1259_s29 = smov [#allocation8]   ;;  %s1578_s8 = int_to_ptr.vmem [resolvable:$true] %s883_s8 }
 0x205   : > { %s1576_s15 = scalar_lea.hbm %s1629_s5, %s1022_s30  ;;  %s1179_s11 = scalar_lea.vmem %s1578_s8, %s1565_s25 }
 0x206   : > { %p1180_p3 = scmp.ne.s32.totalorder %s1578_s8, %s1179_s11  ;;  %s1183_s7 = sshll.u32 %s1259_s29, 4  ;;  %s1184_s7 = int_to_ptr.vmem [resolvable:$false] %s1183_s7 }
 0x207   : > { %s1185_s22 = scalar_lea.vmem %s1184_s7, 3584  ;;  %p1186_p5 = scmp.lt.s32.totalorder %s1578_s8, %s1184_s7 }
 0x208   : > { %p1181_p6 = pnand %p1180_p3, %p997_p1  ;;  %p1187_p13 = scmp.lt.s32.totalorder %s1185_s22, %s1179_s11 }
 0x20a   : > { %p1182_p11 = pneg %p1181_p6  ;;  %p1188_p2 = por %p1187_p13, %p1186_p5 }
 0x20c   : > { %p1189_p12 = pnand %p1188_p2, %p1182_p11 }
 0x20e   : > { %1192 = shalt.err (!%p1189_p12)
}
 0x20f   : > { %s1193_s12 = scalar_lea.hbm %s1576_s15, %s1565_s25  ;;  %s1197_s17 = scalar_lea.hbm %s1629_s5, 2688 }
 0x210   : > { %p1194_p7 = scmp.ne.s32.totalorder %s1576_s15, %s1193_s12  ;;  %p1198_p9 = scmp.lt.u32.totalorder %s1576_s15, %s1629_s5 }
 0x211   : > { %p1199_p10 = scmp.lt.u32.totalorder %s1197_s17, %s1193_s12  ;;  %p1201_p6 = scmp.lt.u32.totalorder %s1193_s12, %s1576_s15 }
 0x212   : > { %p1195_p0 = pnand %p1194_p7, %p997_p1 }
 0x213   : > { %p1200_p3 = por %p1199_p10, %p1198_p9 }
 0x214   : > { %p1196_p8 = pneg %p1195_p0 }
 0x215   : > { %p1202_p11 = por %p1201_p6, %p1200_p3 }
 0x217   : > { %p1203_p5 = pnand %p1202_p11, %p1196_p8 }
 0x219   : > { %1206 = shalt.err (!%p1203_p5)
}
 0x21a   : > { %s1260_s30 = smov 896   ;;  %s1261_s10 = smov 56  }
 0x21b   : > { %889 = dma.vmem_to_hbm [thread:$0]  (%p997_p1), %s1578_s8, %s1565_s25, %s1576_s15, %s862_s26, %s1260_s30, %s1260_s30, %s1261_s10  }
 0x21c PF: > { %s898_s14 = sand.u32 1, %s1237_s18   ;;  %p1645_p13 = scmp.ne.s32.totalorder %s1636_s6, 0 }
 0x21d   : > { %s899_s11 = scalar_lea.sflag [#allocation4], %s898_s14 }
 0x21e   : > { %p1041_p2 = pnand %p979_p4, %p1645_p13 }
 0x220   : > { %1232 = dma.done.wait (!%p1041_p2), %s899_s11, 1792  }
 0x221   : > { %1234 = vsyncadd (!%p1041_p2), %s899_s11, 4294965504  ;;  %p19_p12 = scmp.ge.s32.totalorder %s1317_s24, 4   ;;  %s1646_s18 = smov %s1241_s19 }
 0x222   : > { %s1647_s19 = smov %s1245_s20  ;;  %s1648_s20 = smov %s1329_s27 }
 0x223   : > { %s1649_s21 = smov %s1317_s24  ;;  %21 = sbr.rel (!%p19_p12) target bundleno = 6 (0x6), region = 94 }
 0x22a   :  { %904 = vsyncpa [#allocation3], 1 }
 0x22b   :  { %906 = vsyncpa [#allocation3 + $0x1], 1 }
 0x22c   :  { %907 = vsyncpa [#allocation6], 1 }
 0x22d   :  { %908 = vsyncpa [#allocation4], 1 }
 0x22e   :  { %910 = vsyncpa [#allocation4 + $0x1], 1 }

</bundles_post_ra>
